<compile_context>
chip_gen: v7x
topology: tpu7x:2x2x1
jax: 0.10.0
libtpu: 0.0.40
codegen_flags: <defaults>
</compile_context>

<pallas_src>
import jax
import jax.numpy as jnp
from jax.experimental import pallas as pl
from jax.experimental.pallas import tpu as pltpu


def _sine_kernel(x_ref, o_ref):
    # Elementwise y = sin(30 * x); keep math in f32 (EUP/VPU), cast on store.
    x = x_ref[...].astype(jnp.float32)
    o_ref[...] = jnp.sin(30.0 * x).astype(o_ref.dtype)


def _round_up(a, b):
    return ((a + b - 1) // b) * b


def sine(x, *, lane_cols=512, max_block_rows=1024):
    """Elementwise sin(30*x) for any floating input shape via a Pallas kernel."""
    orig_shape = x.shape
    orig_dtype = x.dtype
    n = x.size

    # Repack into a lane-dense 2D slab: last dim = lane_cols (multiple of 128).
    flat = x.reshape(-1)
    rows = pl.cdiv(n, lane_cols)
    rows = _round_up(rows, 8)                       # sublane multiple
    block_rows = min(max_block_rows, rows)          # big tiles, low per-step overhead
    rows = _round_up(rows, block_rows)              # grid divides evenly
    padded_n = rows * lane_cols
    if padded_n != n:
        flat = jnp.pad(flat, (0, padded_n - n))     # zero pad; sin(30*0)=0, sliced off below
    x2 = flat.reshape(rows, lane_cols)

    grid = (rows // block_rows,)
    itemsize = jnp.dtype(orig_dtype).itemsize
    cost = pl.CostEstimate(
        flops=n,                    # the 30*x multiply
        transcendentals=n,          # one sin per element
        bytes_accessed=2 * n * itemsize,
    )

    out2 = pl.pallas_call(
        _sine_kernel,
        out_shape=jax.ShapeDtypeStruct((rows, lane_cols), orig_dtype),
        grid=grid,
        in_specs=[pl.BlockSpec((block_rows, lane_cols), lambda i: (i, 0))],
        out_specs=pl.BlockSpec((block_rows, lane_cols), lambda i: (i, 0)),
        compiler_params=pltpu.CompilerParams(
            dimension_semantics=("parallel",)),     # shards across TCs on v7x
        cost_estimate=cost,
    )(x2)

    return out2.reshape(-1)[:n].reshape(orig_shape)


def sine_reference(x):
    return jnp.sin(30.0 * x)


if __name__ == "__main__":
    key = jax.random.PRNGKey(0)

    # Small shape consistent with the module's typical use in a SIREN MLP:
    # pre-activation hidden of shape (num_coords, hidden) = (256, 32).
    key, k1, k2 = jax.random.split(key, 3)
    x = jax.random.uniform(k1, (256, 32), jnp.float32, minval=-1.0, maxval=1.0)

    out = jax.block_until_ready(sine(x))
    ref = sine_reference(x)
    assert out.shape == x.shape and out.dtype == x.dtype
    assert jnp.allclose(out, ref, atol=1e-5, rtol=1e-5), "mismatch vs reference"

    # Second check: ragged shape exercising the flatten/pad path.
    y = jax.random.uniform(k2, (3, 5, 70), jnp.float32, minval=-2.0, maxval=2.0)
    out_y = jax.block_until_ready(sine(y))
    assert jnp.allclose(out_y, sine_reference(y), atol=1e-5, rtol=1e-5)

    print("KERNEL_OK")
</pallas_src>

<mosaic_0001>
module attributes {stable_mosaic.version = 11 : i64} {
  func.func @_sine_kernel(%arg0: i32, %arg1: memref<16x512xf32, #tpu.memory_space<vmem>>, %arg2: memref<16x512xf32, #tpu.memory_space<vmem>>) attributes {dimension_semantics = [#tpu.dimension_semantics<parallel>], iteration_bounds = array<i64: 1>, scalar_prefetch = 0 : i64, scratch_operands = 0 : i64, tpu.core_type = #tpu.core_type<tc>, window_params = [{transform_indices = @transform_0, window_bounds = array<i64: 16, 512>}, {transform_indices = @transform_1, window_bounds = array<i64: 16, 512>}]} {
    %c0 = arith.constant 0 : index
    %c0_0 = arith.constant 0 : index
    %0 = vector.load %arg1[%c0, %c0_0] : memref<16x512xf32, #tpu.memory_space<vmem>>, vector<16x512xf32>
    %cst = arith.constant 3.000000e+01 : f32
    %1 = vector.broadcast %cst : f32 to vector<16x512xf32>
    %2 = arith.mulf %1, %0 : vector<16x512xf32>
    %3 = math.sin %2 : vector<16x512xf32>
    %c0_1 = arith.constant 0 : index
    %c0_2 = arith.constant 0 : index
    %4 = vector.load %arg2[%c0_1, %c0_2] : memref<16x512xf32, #tpu.memory_space<vmem>>, vector<16x512xf32>
    tpu.vector_store %arg2[%c0_1, %c0_2], %3 {strides = array<i32>} : memref<16x512xf32, #tpu.memory_space<vmem>>, vector<16x512xf32>,
    return
  }
  func.func @transform_0(%arg0: i32) -> (i32, i32) {
    %c0_i32 = arith.constant 0 : i32
    %c0_i32_0 = arith.constant 0 : i32
    return %arg0, %c0_i32 : i32, i32
  }
  func.func @transform_1(%arg0: i32) -> (i32, i32) {
    %c0_i32 = arith.constant 0 : i32
    %c0_i32_0 = arith.constant 0 : i32
    return %arg0, %c0_i32 : i32, i32
  }
}

</mosaic_0001>

<bundles_post_ra>
// kernel: tpu_custom_call.1
= control target key start
LH: loop header
LB: loop body
LE: loop exit
PB: predicated region body
PF: predicated region fallthrough
CT: control target
= control target key end

     0   :  { %6 = vsyncpa [#allocation3], 0  ;;  %s1713_s0 = inlined_call_operand.hbm [shape: f32[16,512], index: 0, kind: input, shape index: {}]   ;;  %s1714_s1 = inlined_call_operand.hbm [shape: f32[16,512], index: 1, kind: output, shape index: {}]  }
   0x1   :  { %7 = vsyncpa [#allocation4], 0  ;;  %s1050_s6 = smov [#allocation2]   ;;  %s1002_s10 = scalar_lea.hbm %s1713_s0, 1024 }
   0x2   :  { %s13_s7 = sshll.u32 %s1050_s6, 4  ;;  %p1003_p0 = scmp.ne.s32.totalorder %s1713_s0, %s1002_s10  ;;  %s14_s7 = int_to_ptr.vmem [resolvable:$true] %s13_s7 }
   0x3   :  { %p1006_p1 = scmp.lt.u32.totalorder %s1002_s10, %s1713_s0 }
   0x5   :  { %p1008_p2 = pnand %p1006_p1, %p1003_p0 }
   0x7   :  { %1011 = shalt.err (!%p1008_p2)
}
   0x8   :  { %s1012_s15 = scalar_lea.vmem %s14_s7, 1024  ;;  %p1017_p4 = scmp.lt.s32.totalorder %s14_s7, %s14_s7 }
   0x9   :  { %p1013_p3 = scmp.ne.s32.totalorder %s14_s7, %s1012_s15  ;;  %p1018_p5 = scmp.lt.s32.totalorder %s1012_s15, %s1012_s15 }
   0xb   :  { %p1019_p6 = por %p1018_p5, %p1017_p4 }
   0xd   :  { %p1020_p7 = pnand %p1019_p6, %p1013_p3 }
   0xf   :  { %1023 = shalt.err (!%p1020_p7)
}
  0x10   :  { %s1051_s16 = smov 512   ;;  %s1052_s17 = smov 32  }
  0x11   :  { %19 = dma.hbm_to_vmem [thread:$0]  %s1713_s0, 1024, %s14_s7, [#allocation3], %s1051_s16, %s1051_s16, %s1052_s17  }
  0x12   :  { %1046 = dma.done.wait [#allocation3], 1024  }
  0x13   :  { %1047 = vsyncadd [#allocation3], 4294966272  ;;  %v23_v0 = vld [vmem:[#allocation2] sm:$0xff]  ;;  %v24_v1 = vld [vmem:[#allocation2 + $0x8] sm:$0xff]  ;;  %v1053_v36 = vmov 683565275  }
  0x14   :  { %v25_v2 = vld [vmem:[#allocation2 + $0x10] sm:$0xff]  ;;  %v1085_v3 = vmul.f32 30.0, %v23_v0  ;;  %v1087_v4 = vmul.f32 30.0, %v24_v1  ;;  %v26_v18 = vld [vmem:[#allocation2 + $0x18] sm:$0xff]  ;;  %v1054_v38 = vmov 2475754826  }
  0x15   :  { %v1089_v5 = vmul.f32 30.0, %v25_v2  ;;  %v1101_v25 = vmul.f32 30.0, %v26_v18  ;;  %v1055_v40 = vmov 2131351028   ;;  %v1056_v42 = vmov 2102212464  }
  0x16   :  { %v39_v6 = vand.u32 2147483647, %v1085_v3  ;;  %v42_v7 = vand.u32 2139095040, %v1085_v3  ;;  %v143_v8 = vand.u32 2147483647, %v1087_v4  ;;  %v146_v9 = vand.u32 2139095040, %v1087_v4 }
  0x17   :  { %v250_v14 = vand.u32 2139095040, %v1089_v5  ;;  %v247_v23 = vand.u32 2147483647, %v1089_v5  ;;  %v1057_v44 = vmov 920167782   ;;  %vm41_vm12 = vcmp.lt.s32.totalorder %v1085_v3, 0 }
  0x18   :  { %v43_v10 = vshrl.u32 %v42_v7, 23  ;;  %v46_v11 = vand.u32 8388607, %v39_v6  ;;  %v147_v12 = vshrl.u32 %v146_v9, 23  ;;  %v150_v13 = vand.u32 8388607, %v143_v8 }
  0x19   :  { %v251_v17 = vshrl.u32 %v250_v14, 23  ;;  %v1109_v33 = vand.u32 8388607, %v247_v23  ;;  %v1058_v52 = vmov 1326507024   ;;  %s1059_s0 = smov [#allocation5]  }
  0x1a   :  { %v896_v15 = vadd.s32 4294967169, %v43_v10  ;;  %v900_v16 = vadd.s32 4294967169, %v147_v12  ;;  %v47_v19 = vor.u32 8388608, %v46_v11  ;;  %v151_v21 = vor.u32 8388608, %v150_v13  ;;  %s884_s20 = sshll.u32 %s1059_s0, 4  ;;  %s885_s20 = int_to_ptr.vmem [resolvable:$true] %s884_s20 }
  0x1b   :  { %v904_v24 = vadd.s32 4294967169, %v251_v17  ;;  %vm1196_vm14 = vcmp.le.f32.partialorder %v39_v6, 0.7853982  ;;  %s1024_s21 = scalar_lea.vmem %s885_s20, 1024  ;;  %p1029_p9 = scmp.lt.s32.totalorder %s885_s20, %s885_s20 }
  0x1c   :  { %v49_v20 = vadd.s32 1, %v896_v15  ;;  %v153_v22 = vadd.s32 1, %v900_v16  ;;  %v1103_v29 = vshll.u32 %v47_v19, 8  ;;  %v1105_v32 = vshll.u32 %v151_v21, 8  ;;  %p1025_p8 = scmp.ne.s32.totalorder %s885_s20, %s1024_s21  ;;  %p1030_p10 = scmp.lt.s32.totalorder %s1024_s21, %s1024_s21 }
  0x1d   :  { %v1111_v34 = vadd.s32 1, %v904_v24 }
  0x1e   :  { %vm50_vm0 = vcmp.gt.s32.totalorder %v49_v20, 0  ;;  %vm154_vm1 = vcmp.gt.s32.totalorder %v153_v22, 0  ;;  %p1031_p11 = por %p1030_p10, %p1029_p9 }
  0x1f   :  { %v51_v26 = vsel %vm50_vm0, %v49_v20, 0  ;;  %v155_v30 = vsel %vm154_vm1, %v153_v22, 0  ;;  %vm258_vm6 = vcmp.gt.s32.totalorder %v1111_v34, 0 }
  0x20   :  { %v52_v27 = vshrl.u32 %v51_v26, 5  ;;  %v53_v28 = vand.u32 31, %v51_v26  ;;  %v157_v31 = vand.u32 31, %v155_v30  ;;  %v1118_v46 = vshrl.u32 %v155_v30, 5  ;;  %p1032_p12 = pnand %p1031_p11, %p1025_p8 }
  0x22   :  { %v54_v35 = vsub.s32 32, %v53_v28  ;;  %v56_v37 = vshll.u32 %v1053_v36, %v53_v28  ;;  %v59_v39 = vshll.u32 %v1054_v38, %v53_v28  ;;  %v62_v41 = vshll.u32 %v1055_v40, %v53_v28 }
  0x23   :  { %v65_v43 = vshll.u32 %v1056_v42, %v53_v28  ;;  %v68_v45 = vshll.u32 %v1057_v44, %v53_v28  ;;  %vm71_vm2 = vcmp.lt.s32.totalorder %v52_v27, 1  ;;  %vm72_vm3 = vcmp.lt.s32.totalorder %v52_v27, 2 }
  0x24   :  { %v55_v47 = vshrl.u32 %v1053_v36, %v54_v35  ;;  %v57_v48 = vshrl.u32 %v1054_v38, %v54_v35  ;;  %v60_v49 = vshrl.u32 %v1055_v40, %v54_v35  ;;  %v63_v50 = vshrl.u32 %v1056_v42, %v54_v35 }
  0x25   :  { %v66_v51 = vshrl.u32 %v1057_v44, %v54_v35  ;;  %v69_v53 = vshrl.u32 %v1058_v52, %v54_v35  ;;  %vm74_vm4 = vcmp.lt.s32.totalorder %v52_v27, 4  ;;  %v158_v57 = vsub.s32 32, %v157_v31 }
  0x26   :  { %v58_v54 = vor.u32 %v57_v48, %v56_v37  ;;  %v61_v55 = vor.u32 %v60_v49, %v59_v39  ;;  %v64_v56 = vor.u32 %v63_v50, %v62_v41  ;;  %vm73_vm5 = vcmp.lt.s32.totalorder %v52_v27, 3 }
  0x27   :  { %v67_v58 = vor.u32 %v66_v51, %v65_v43  ;;  %v70_v59 = vor.u32 %v69_v53, %v68_v45  ;;  %v160_v60 = vshll.u32 %v1053_v36, %v157_v31  ;;  %v163_v9 = vshll.u32 %v1054_v38, %v157_v31 }
  0x28   :  { %v75_v61 = vsel %vm71_vm2, %v55_v47, %v58_v54  ;;  %v76_v62 = vsel %vm74_vm4, %v64_v56, 2102212464  ;;  %v79_v63 = vsel %vm71_vm2, %v58_v54, %v61_v55  ;;  %v83_v0 = vsel %vm71_vm2, %v61_v55, %v64_v56 }
  0x29   :  { %v77_v1 = vsel %vm73_vm5, %v61_v55, %v76_v62  ;;  %v80_v2 = vsel %vm74_vm4, %v67_v58, 920167782  ;;  %v84_v7 = vsel %vm74_vm4, %v70_v59, 1326507024  ;;  %v159_v12 = vshrl.u32 %v1053_v36, %v158_v57  ;;  %v28_v62 = vld [vmem:[#allocation2 + $0x28] sm:$0xff] }
  0x2a   :  { %v81_v10 = vsel %vm73_vm5, %v64_v56, %v80_v2  ;;  %v85_v11 = vsel %vm73_vm5, %v67_v58, %v84_v7  ;;  %v161_v13 = vshrl.u32 %v1054_v38, %v158_v57  ;;  %v78_v14 = vsel %vm72_vm3, %v75_v61, %v77_v1  ;;  %v27_v61 = vld [vmem:[#allocation2 + $0x20] sm:$0xff] }
  0x2b   :  { %v82_v15 = vsel %vm72_vm3, %v79_v63, %v81_v10  ;;  %v86_v16 = vsel %vm72_vm3, %v83_v0, %v85_v11  ;;  %v164_v17 = vshrl.u32 %v1055_v40, %v158_v57  ;;  %v166_v26 = vshll.u32 %v1055_v40, %v157_v31 }
  0x2c   :  { %v1139_v18 = vmul.u32.u64.low %v1103_v29, %v86_v16  ;;  %v1140_v19 = vmul.u32.u64.high %v1103_v29, %v86_v16, %v1139_v18  ;;  %v1143_v20 = vmul.u32.u64.low %v1103_v29, %v82_v15  ;;  %v1144_v21 = vmul.u32.u64.high %v1103_v29, %v82_v15, %v1143_v20 }
  0x2d   :  { %v162_v22 = vor.u32 %v161_v13, %v160_v60  ;;  %v165_v24 = vor.u32 %v164_v17, %v163_v9  ;;  %v167_v28 = vshrl.u32 %v1056_v42, %v158_v57  ;;  %v169_v27 = vshll.u32 %v1056_v42, %v157_v31 }
  0x2e   :  { %v170_v30 = vshrl.u32 %v1057_v44, %v158_v57  ;;  %v172_v35 = vshll.u32 %v1057_v44, %v157_v31  ;;  %v173_v37 = vshrl.u32 %v1058_v52, %v158_v57  ;;  %v94_v39 = vmul.u32 %v1103_v29, %v78_v14 }
  0x2f   :  { %v168_v41 = vor.u32 %v167_v28, %v166_v26  ;;  %vm175_vm7 = vcmp.lt.s32.totalorder %v1118_v46, 1  ;;  %vm176_vm8 = vcmp.lt.s32.totalorder %v1118_v46, 2  ;;  %vm96_vm9 = vc.u32 %v1140_v19, %v1143_v20 }
  0x30   :  { %v97_v43 = vadd.s32 1, %v1144_v21  ;;  %v171_v45 = vor.u32 %v170_v30, %v169_v27  ;;  %vm177_vm10 = vcmp.lt.s32.totalorder %v1118_v46, 3  ;;  %v174_v47 = vor.u32 %v173_v37, %v172_v35 }
  0x31   :  { %vm178_vm11 = vcmp.lt.s32.totalorder %v1118_v46, 4  ;;  %v179_v31 = vsel %vm175_vm7, %v159_v12, %v162_v22  ;;  %v183_v48 = vsel %vm175_vm7, %v162_v22, %v165_v24  ;;  %v187_v51 = vsel %vm175_vm7, %v165_v24, %v168_v41 }
  0x32   :  { %v98_v29 = vsel %vm96_vm9, %v97_v43, %v1144_v21  ;;  %v180_v49 = vsel %vm178_vm11, %v168_v41, 2102212464  ;;  %v184_v50 = vsel %vm178_vm11, %v171_v45, 920167782  ;;  %v188_v56 = vsel %vm178_vm11, %v174_v47, 1326507024 }
  0x33   :  { %v99_v53 = vadd.s32 %v98_v29, %v94_v39  ;;  %v181_v54 = vsel %vm177_vm10, %v165_v24, %v180_v49  ;;  %v185_v55 = vsel %vm177_vm10, %v168_v41, %v184_v50  ;;  %v189_v59 = vsel %vm177_vm10, %v171_v45, %v188_v56 }
  0x34   :  { %v182_v57 = vsel %vm176_vm8, %v179_v31, %v181_v54  ;;  %v186_v58 = vsel %vm176_vm8, %v183_v48, %v185_v55  ;;  %v259_v60 = vsel %vm258_vm6, %v1111_v34, 0  ;;  %v190_v0 = vsel %vm176_vm8, %v187_v51, %v189_v59 }
  0x35   :  { %v100_v63 = vadd.s32 536870912, %v99_v53  ;;  %v1172_v1 = vmul.u32.u64.low %v1105_v32, %v186_v58  ;;  %v1173_v2 = vmul.u32.u64.high %v1105_v32, %v186_v58, %v1172_v1  ;;  %v255_v10 = vor.u32 8388608, %v1109_v33 }
  0x36   :  { %v1177_v7 = vmul.u32.u64.low %v1105_v32, %v190_v0  ;;  %v1178_v9 = vmul.u32.u64.high %v1105_v32, %v190_v0, %v1177_v7  ;;  %v354_v11 = vand.u32 2139095040, %v1101_v25  ;;  %v261_v12 = vand.u32 31, %v259_v60 }
  0x37   :  { %v101_v34 = vshrl.u32 %v100_v63, 30  ;;  %v1182_v13 = vmul.f32 30.0, %v27_v61  ;;  %v1184_v14 = vmul.f32 30.0, %v28_v62  ;;  %v198_v46 = vmul.u32 %v1105_v32, %v182_v57 }
  0x38   :  { %v201_v16 = vadd.s32 1, %v1173_v2  ;;  %v262_v17 = vsub.s32 32, %v261_v12  ;;  %vm200_vm13 = vc.u32 %v1178_v9, %v1172_v1  ;;  %v1191_v33 = vshll.u32 %v255_v10, 8 }
  0x39   :  { %v102_v15 = vshll.u32 %v101_v34, 30  ;;  %v351_v18 = vand.u32 2147483647, %v1101_v25  ;;  %v355_v21 = vshrl.u32 %v354_v11, 23  ;;  %v125_v24 = vsub.s32 4, %v101_v34 }
  0x3a   :  { %v202_v26 = vsel %vm200_vm13, %v201_v16, %v1173_v2  ;;  %v260_v28 = vshrl.u32 %v259_v60, 5  ;;  %v264_v30 = vshll.u32 %v1053_v36, %v261_v12  ;;  %v265_v35 = vshrl.u32 %v1054_v38, %v262_v17 }
  0x3b   :  { %v1200_v32 = vsub.s32 %v99_v53, %v102_v15  ;;  %v203_v27 = vadd.s32 %v202_v26, %v198_v46  ;;  %v267_v37 = vshll.u32 %v1054_v38, %v261_v12  ;;  %v268_v6 = vshrl.u32 %v1055_v40, %v262_v17 }
  0x3c   :  { %v270_v41 = vshll.u32 %v1055_v40, %v261_v12  ;;  %v271_v43 = vshrl.u32 %v1056_v42, %v262_v17  ;;  %v95_v45 = vadd.s32 %v1143_v20, %v1140_v19  ;;  %v273_v31 = vshll.u32 %v1056_v42, %v261_v12 }
  0x3d   :  { %v105_v39 = vsub.s32 0, %v1200_v32  ;;  %v204_v47 = vadd.s32 536870912, %v203_v27  ;;  %v908_v48 = vadd.s32 4294967169, %v355_v21  ;;  %v126_v49 = vsel %vm41_vm12, %v125_v24, %v101_v34 }
  0x3e   :  { %v274_v50 = vshrl.u32 %v1057_v44, %v262_v17  ;;  %vm282_vm15 = vcmp.lt.s32.totalorder %v260_v28, 4  ;;  %v263_v53 = vshrl.u32 %v1053_v36, %v262_v17  ;;  %v276_v54 = vshll.u32 %v1057_v44, %v261_v12 }
  0x3f   :  { %v897_v29 = vmin.u32 %v105_v39, %v1200_v32  ;;  %v1217_v51 = vshrl.u32 %v204_v47, 30  ;;  %v277_v19 = vshrl.u32 %v1058_v52, %v262_v17  ;;  %v266_v55 = vor.u32 %v265_v35, %v264_v30 }
  0x40   :  { %v269_v56 = vor.u32 %v268_v6, %v267_v37  ;;  %v272_v57 = vor.u32 %v271_v43, %v270_v41  ;;  %v275_v59 = vor.u32 %v274_v50, %v273_v31  ;;  %vm279_vm0 = vcmp.lt.s32.totalorder %v260_v28, 1 }
  0x41   :  { %v107_v20 = vclz %v897_v29  ;;  %v206_v58 = vshll.u32 %v1217_v51, 30  ;;  %vm281_vm1 = vcmp.lt.s32.totalorder %v260_v28, 3  ;;  %v278_v61 = vor.u32 %v277_v19, %v276_v54 }
  0x42   :  { %v284_v62 = vsel %vm282_vm15, %v272_v57, 2102212464  ;;  %v361_v63 = vadd.s32 1, %v908_v48  ;;  %v128_v0 = vsel %vm1196_vm14, 0, %v126_v49  ;;  %vm280_vm2 = vcmp.lt.s32.totalorder %v260_v28, 2 }
  0x43   :  { %v898_v60 = vadd.s32 4294967294, %v107_v20  ;;  %v1226_v2 = vsub.s32 %v203_v27, %v206_v58  ;;  %v288_v7 = vsel %vm282_vm15, %v275_v59, 920167782  ;;  %v283_v10 = vsel %vm279_vm0, %v263_v53, %v266_v55 }
  0x44   :  { %v287_v11 = vsel %vm279_vm0, %v266_v55, %v269_v56  ;;  %v289_v34 = vsel %vm281_vm1, %v272_v57, %v288_v7  ;;  %v285_v15 = vsel %vm281_vm1, %v269_v56, %v284_v62  ;;  %v291_v16 = vsel %vm279_vm0, %v269_v56, %v272_v57 }
  0x45   :  { %vm899_vm3 = vcmp.lt.s32.totalorder %v898_v60, 0  ;;  %v209_v46 = vsub.s32 0, %v1226_v2  ;;  %v292_v26 = vsel %vm282_vm15, %v278_v61, 1326507024  ;;  %vm145_vm4 = vcmp.lt.s32.totalorder %v1087_v4, 0 }
  0x46   :  { %v110_v12 = vsel %vm899_vm3, 0, %v898_v60  ;;  %v290_v30 = vsel %vm280_vm2, %v287_v11, %v289_v34  ;;  %v293_v35 = vsel %vm281_vm1, %v275_v59, %v292_v26  ;;  %vm362_vm5 = vcmp.gt.s32.totalorder %v361_v63, 0 }
  0x47   :  { %v111_v17 = vsub.s32 32, %v110_v12  ;;  %v112_v21 = vshll.u32 %v1200_v32, %v110_v12  ;;  %v115_v24 = vsub.s32 4294967266, %v110_v12  ;;  %v901_v27 = vmin.u32 %v209_v46, %v1226_v2 }
  0x48   :  { %v294_v6 = vsel %vm280_vm2, %v291_v16, %v293_v35  ;;  %v132_v41 = vadd.s32 3, %v128_v0  ;;  %v286_v32 = vsel %vm280_vm2, %v283_v10, %v285_v15  ;;  %v1245_v47 = vand.u32 8388607, %v351_v18 }
  0x49   :  { %v113_v37 = vshrl.u32 %v95_v45, %v111_v17  ;;  %v116_v39 = vadd.s32 127, %v115_v24  ;;  %v211_v43 = vclz %v901_v27  ;;  %v363_v54 = vsel %vm362_vm5, %v361_v63, 0 }
  0x4a   :  { %v1248_v29 = vmul.u32.u64.low %v1191_v33, %v294_v6  ;;  %v1249_v49 = vmul.u32.u64.high %v1191_v33, %v294_v6, %v1248_v29  ;;  %v1252_v45 = vmul.u32.u64.low %v1191_v33, %v290_v30  ;;  %v1253_v53 = vmul.u32.u64.high %v1191_v33, %v290_v30, %v1252_v45 }
  0x4b   :  { %v114_v31 = vor.u32 %v113_v37, %v112_v21  ;;  %v117_v48 = vshll.u32 %v116_v39, 23  ;;  %v902_v50 = vadd.s32 4294967294, %v211_v43  ;;  %v229_v20 = vsub.s32 4, %v1217_v51 }
  0x4c   :  { %v365_v55 = vand.u32 31, %v363_v54  ;;  %v1257_v56 = vand.u32 3, %v132_v41  ;;  %v199_v57 = vadd.s32 %v1172_v1, %v1178_v9  ;;  %v359_v58 = vor.u32 8388608, %v1245_v47 }
  0x4d   :  { %v118_v19 = vor.u32 4788187, %v117_v48  ;;  %v121_v28 = vcvt.s32.f32 %v114_v31  ;;  %vm903_vm6 = vcmp.lt.s32.totalorder %v902_v50, 0  ;;  %v302_v61 = vmul.u32 %v1191_v33, %v286_v32 }
  0x4e   :  { %v214_v60 = vsel %vm903_vm6, 0, %v902_v50  ;;  %vm304_vm7 = vc.u32 %v1249_v49, %v1252_v45  ;;  %vm1267_vm8 = vcmp.le.f32.partialorder %v143_v8, 0.7853982  ;;  %v305_v9 = vadd.s32 1, %v1253_v53 }
  0x4f   :  { %v119_v59 = vand.u32 2147483647, %v118_v19  ;;  %v215_v63 = vsub.s32 32, %v214_v60  ;;  %v216_v0 = vshll.u32 %v1226_v2, %v214_v60  ;;  %v219_v1 = vsub.s32 4294967266, %v214_v60 }
  0x50   :  { %v230_v33 = vsel %vm145_vm4, %v229_v20, %v1217_v51  ;;  %v1276_v10 = vshrl.u32 %v363_v54, 5  ;;  %v366_v11 = vsub.s32 32, %v365_v55  ;;  %v306_v8 = vsel %vm304_vm7, %v305_v9, %v1253_v53 }
  0x51   :  { %v122_v7 = vmul.f32 %v121_v28, %v119_v59  ;;  %v217_v34 = vshrl.u32 %v199_v57, %v215_v63  ;;  %v220_v12 = vadd.s32 127, %v219_v1  ;;  %v368_v46 = vshll.u32 %v1053_v36, %v365_v55 }
  0x52   :  { %v307_v16 = vadd.s32 %v306_v8, %v302_v61  ;;  %v369_v2 = vshrl.u32 %v1054_v38, %v366_v11  ;;  %v371_v17 = vshll.u32 %v1054_v38, %v365_v55  ;;  %v372_v26 = vshrl.u32 %v1055_v40, %v366_v11 }
  0x53   :  { %v123_v15 = vxor.u32 2147483648, %v122_v7  ;;  %v218_v21 = vor.u32 %v217_v34, %v216_v0  ;;  %v221_v24 = vshll.u32 %v220_v12, 23  ;;  %v374_v51 = vshll.u32 %v1055_v40, %v365_v55 }
  0x54   :  { %v308_v30 = vadd.s32 536870912, %v307_v16  ;;  %v375_v35 = vshrl.u32 %v1056_v42, %v366_v11  ;;  %v377_v37 = vshll.u32 %v1056_v42, %v365_v55  ;;  %v370_v43 = vor.u32 %v369_v2, %v368_v46 }
  0x55   :  { %v124_v27 = vsel %vm41_vm12, %v123_v15, %v122_v7  ;;  %v222_v6 = vor.u32 4788187, %v221_v24  ;;  %v225_v41 = vcvt.s32.f32 %v218_v21  ;;  %v373_v47 = vor.u32 %v372_v26, %v371_v17 }
  0x56   :  { %v127_v39 = vsel %vm1196_vm14, %v1085_v3, %v124_v27  ;;  %v309_v32 = vshrl.u32 %v308_v30, 30  ;;  %v378_v31 = vshrl.u32 %v1057_v44, %v366_v11  ;;  %v380_v29 = vshll.u32 %v1057_v44, %v365_v55 }
  0x57   :  { %970 = vcosq.f32 %v127_v39  ;;  %v223_v48 = vand.u32 2147483647, %v222_v6  ;;  %v381_v50 = vshrl.u32 %v1058_v52, %v366_v11  ;;  %v232_v53 = vsel %vm1267_vm8, 0, %v230_v33 }
  0x58   :  { %972 = vsinq.f32 %v127_v39  ;;  %v310_v54 = vshll.u32 %v309_v32, 30  ;;  %v379_v22 = vor.u32 %v378_v31, %v377_v37  ;;  %vm383_vm9 = vcmp.lt.s32.totalorder %v1276_v10, 1 }
  0x59   :  { %vm135_vm10 = vcmp.eq.s32.totalorder %v1257_v56, 0  ;;  %v226_v19 = vmul.f32 %v225_v41, %v223_v48  ;;  %v367_v28 = vshrl.u32 %v1053_v36, %v366_v11  ;;  %v376_v20 = vor.u32 %v375_v35, %v374_v51 }
  0x5a   :  { %v1299_v57 = vshll.u32 %v359_v58, 8  ;;  %vm134_vm11 = vcmp.lt.s32.totalorder %v1257_v56, 2  ;;  %vm249_vm12 = vcmp.lt.s32.totalorder %v1089_v5, 0  ;;  %v1303_v55 = vsub.s32 %v307_v16, %v310_v54 }
  0x5b   :  { %v382_v59 = vor.u32 %v381_v50, %v380_v29  ;;  %vm385_vm13 = vcmp.lt.s32.totalorder %v1276_v10, 3  ;;  %vm386_vm14 = vcmp.lt.s32.totalorder %v1276_v10, 4  ;;  %vm131_vm15 = vweird.f32 %v1085_v3 }
  0x5c   :  { %v227_v60 = vxor.u32 2147483648, %v226_v19  ;;  %vm384_vm0 = vcmp.lt.s32.totalorder %v1276_v10, 2  ;;  %v388_v58 = vsel %vm386_vm14, %v376_v20, 2102212464  ;;  %v391_v61 = vsel %vm383_vm9, %v370_v43, %v373_v47 }
  0x5d   :  { %v236_v63 = vadd.s32 3, %v232_v53  ;;  %v313_v0 = vsub.s32 0, %v1303_v55  ;;  %v333_v1 = vsub.s32 4, %v309_v32  ;;  %v392_v9 = vsel %vm386_vm14, %v379_v22, 920167782 }
  0x5e   :  { %v228_v7 = vsel %vm145_vm4, %v227_v60, %v226_v19  ;;  %v387_v33 = vsel %vm383_vm9, %v367_v28, %v370_v43  ;;  %v389_v11 = vsel %vm385_vm13, %v373_v47, %v388_v58  ;;  %v393_v34 = vsel %vm385_vm13, %v376_v20, %v392_v9 }
  0x5f   :  { %v231_v12 = vsel %vm1267_vm8, %v1087_v4, %v228_v7  ;;  %vm1329_vm1 = vcmp.le.f32.partialorder %v247_v23, 0.7853982  ;;  %v905_v46 = vmin.u32 %v313_v0, %v1303_v55  ;;  %v394_v15 = vsel %vm384_vm0, %v391_v61, %v393_v34 }
  0x60   :  { %v395_v16 = vsel %vm383_vm9, %v373_v47, %v376_v20  ;;  %974 = vcosq.f32 %v231_v12  ;;  %v396_v2 = vsel %vm386_vm14, %v382_v59, 1326507024  ;;  %vm138_vm2 = vcmp.eq.s32.totalorder %v1257_v56, 2 }
  0x61   :  { %v1341_v62 = vmul.u32.u64.low %v1299_v57, %v394_v15  ;;  %v1342_v17 = vmul.u32.u64.high %v1299_v57, %v394_v15, %v1341_v62  ;;  %v971_v23 = vpop.eup %970  ;;  %976 = vsinq.f32 %v231_v12  ;;  %v237_v21 = vand.u32 3, %v236_v63 }
  0x62   :  { %v315_v24 = vclz %v905_v46  ;;  %v973_v26 = vpop.eup %972  ;;  %v139_v51 = vxor.u32 2147483648, %v971_v23  ;;  %v303_v27 = vadd.s32 %v1252_v45, %v1249_v49  ;;  %v397_v30 = vsel %vm385_vm13, %v379_v22, %v396_v2 }
  0x63   :  { %v455_v35 = vand.u32 2147483647, %v1182_v13  ;;  %v136_v37 = vxor.u32 2147483648, %v973_v26  ;;  %v390_v6 = vsel %vm384_vm0, %v387_v33, %v389_v11  ;;  %v398_v41 = vsel %vm384_vm0, %v395_v16, %v397_v30 }
  0x64   :  { %v906_v39 = vadd.s32 4294967294, %v315_v24  ;;  %v140_v43 = vsel %vm138_vm2, %v139_v51, %v973_v26  ;;  %v334_v47 = vsel %vm249_vm12, %v333_v1, %v309_v32  ;;  %vm235_vm3 = vweird.f32 %v1087_v4 }
  0x65   :  { %v1358_v31 = vmul.u32.u64.low %v1299_v57, %v398_v41  ;;  %v1359_v49 = vmul.u32.u64.high %v1299_v57, %v398_v41, %v1358_v31  ;;  %v137_v45 = vsel %vm135_vm10, %v971_v23, %v136_v37  ;;  %v409_v48 = vadd.s32 1, %v1342_v17 }
  0x66   :  { %vm907_vm4 = vcmp.lt.s32.totalorder %v906_v39, 0  ;;  %v458_v29 = vand.u32 2139095040, %v1182_v13  ;;  %v141_v10 = vsel %vm134_vm11, %v137_v45, %v140_v43  ;;  %vm238_vm5 = vcmp.lt.s32.totalorder %v237_v21, 2 }
  0x67   :  { %v318_v50 = vsel %vm907_vm4, 0, %v906_v39  ;;  %v406_v32 = vmul.u32 %v1299_v57, %v390_v6  ;;  %v142_v53 = vsel %vm131_vm15, nan, %v141_v10  ;;  %vm239_vm6 = vcmp.eq.s32.totalorder %v237_v21, 0 }
  0x68   :  { %v319_v54 = vsub.s32 32, %v318_v50  ;;  %v320_v22 = vshll.u32 %v1303_v55, %v318_v50  ;;  %v323_v19 = vsub.s32 4294967266, %v318_v50  ;;  %v336_v28 = vsel %vm1329_vm1, 0, %v334_v47  ;;  %871 = vst [vmem:[#allocation5] sm:$0xff] %v142_v53 }
  0x69   :  { %vm408_vm7 = vc.u32 %v1359_v49, %v1341_v62  ;;  %v459_v56 = vshrl.u32 %v458_v29, 23  ;;  %v462_v3 = vand.u32 8388607, %v455_v35  ;;  %vm242_vm8 = vcmp.eq.s32.totalorder %v237_v21, 2 }
  0x6a   :  { %v321_v20 = vshrl.u32 %v303_v27, %v319_v54  ;;  %v324_v59 = vadd.s32 127, %v323_v19  ;;  %v410_v57 = vsel %vm408_vm7, %v409_v48, %v1342_v17  ;;  %v975_v60 = vpop.eup %974  ;;  %v559_v61 = vand.u32 2147483647, %v1184_v14 }
  0x6b   :  { %v411_v55 = vadd.s32 %v410_v57, %v406_v32  ;;  %v912_v58 = vadd.s32 4294967169, %v459_v56  ;;  %v977_v63 = vpop.eup %976  ;;  %v243_v0 = vxor.u32 2147483648, %v975_v60  ;;  %v562_v7 = vand.u32 2139095040, %v1184_v14 }
  0x6c   :  { %v322_v1 = vor.u32 %v321_v20, %v320_v22  ;;  %v325_v9 = vshll.u32 %v324_v59, 23  ;;  %v240_v33 = vxor.u32 2147483648, %v977_v63  ;;  %v340_v11 = vadd.s32 3, %v336_v28 }
  0x6d   :  { %v412_v34 = vadd.s32 536870912, %v411_v55  ;;  %v465_v12 = vadd.s32 1, %v912_v58  ;;  %v244_v46 = vsel %vm242_vm8, %v243_v0, %v977_v63  ;;  %v463_v2 = vor.u32 8388608, %v462_v3 }
  0x6e   :  { %v326_v15 = vor.u32 4788187, %v325_v9  ;;  %v329_v16 = vcvt.s32.f32 %v322_v1  ;;  %v241_v17 = vsel %vm239_vm6, %v975_v60, %v240_v33  ;;  %v563_v24 = vshrl.u32 %v562_v7, 23 }
  0x6f   :  { %v413_v23 = vshrl.u32 %v412_v34, 30  ;;  %vm466_vm9 = vcmp.gt.s32.totalorder %v465_v12, 0  ;;  %v245_v26 = vsel %vm238_vm5, %v241_v17, %v244_v46  ;;  %v566_v30 = vand.u32 8388607, %v559_v61 }
  0x70   :  { %v327_v51 = vand.u32 2147483647, %v326_v15  ;;  %v467_v27 = vsel %vm466_vm9, %v465_v12, 0  ;;  %v246_v37 = vsel %vm235_vm3, nan, %v245_v26  ;;  %v1387_v41 = vand.u32 3, %v340_v11 }
  0x71   :  { %v414_v39 = vshll.u32 %v413_v23, 30  ;;  %vm353_vm10 = vcmp.lt.s32.totalorder %v1101_v25, 0  ;;  %v469_v43 = vand.u32 31, %v467_v27  ;;  %872 = vst [vmem:[#allocation5 + $0x8] sm:$0xff] %v246_v37  ;;  %v407_v21 = vadd.s32 %v1341_v62, %v1359_v49 }
  0x72   :  { %v330_v6 = vmul.f32 %v329_v16, %v327_v51  ;;  %v1394_v31 = vshll.u32 %v463_v2, 8  ;;  %v916_v45 = vadd.s32 4294967169, %v563_v24  ;;  %v437_v29 = vsub.s32 4, %v413_v23 }
  0x73   :  { %v1392_v47 = vsub.s32 %v411_v55, %v414_v39  ;;  %v470_v4 = vsub.s32 32, %v469_v43  ;;  %v567_v10 = vor.u32 8388608, %v566_v30  ;;  %v1397_v32 = vshrl.u32 %v467_v27, 5 }
  0x74   :  { %v331_v48 = vxor.u32 2147483648, %v330_v6  ;;  %v472_v53 = vshll.u32 %v1053_v36, %v469_v43  ;;  %v475_v54 = vshll.u32 %v1054_v38, %v469_v43  ;;  %v478_v19 = vshll.u32 %v1055_v40, %v469_v43 }
  0x75   :  { %v417_v50 = vsub.s32 0, %v1392_v47  ;;  %v473_v49 = vshrl.u32 %v1054_v38, %v470_v4  ;;  %v476_v22 = vshrl.u32 %v1055_v40, %v470_v4  ;;  %v479_v20 = vshrl.u32 %v1056_v42, %v470_v4 }
  0x76   :  { %v332_v62 = vsel %vm249_vm12, %v331_v48, %v330_v6  ;;  %v569_v59 = vadd.s32 1, %v916_v45  ;;  %vm1413_vm11 = vcmp.le.f32.partialorder %v351_v18, 0.7853982  ;;  %v471_v3 = vshrl.u32 %v1053_v36, %v470_v4 }
  0x77   :  { %v335_v28 = vsel %vm1329_vm1, %v1089_v5, %v332_v62  ;;  %v909_v56 = vmin.u32 %v417_v50, %v1392_v47  ;;  %v481_v60 = vshll.u32 %v1056_v42, %v469_v43  ;;  %v1419_v55 = vshll.u32 %v567_v10, 8 }
  0x78   :  { %978 = vcosq.f32 %v335_v28  ;;  %v474_v58 = vor.u32 %v473_v49, %v472_v53  ;;  %v477_v63 = vor.u32 %v476_v22, %v475_v54  ;;  %vm346_vm12 = vcmp.eq.s32.totalorder %v1387_v41, 2 }
  0x79   :  { %980 = vsinq.f32 %v335_v28  ;;  %v419_v8 = vclz %v909_v56  ;;  %v480_v0 = vor.u32 %v479_v20, %v478_v19  ;;  %v482_v1 = vshrl.u32 %v1057_v44, %v470_v4 }
  0x7a   :  { %v484_v18 = vshll.u32 %v1057_v44, %v469_v43  ;;  %vm487_vm13 = vcmp.lt.s32.totalorder %v1397_v32, 1  ;;  %vm343_vm14 = vcmp.eq.s32.totalorder %v1387_v41, 0  ;;  %v438_v7 = vsel %vm353_vm10, %v437_v29, %v413_v23 }
  0x7b   :  { %v910_v9 = vadd.s32 4294967294, %v419_v8  ;;  %v485_v33 = vshrl.u32 %v1058_v52, %v470_v4  ;;  %vm490_vm15 = vcmp.lt.s32.totalorder %v1397_v32, 4  ;;  %vm342_vm0 = vcmp.lt.s32.totalorder %v1387_v41, 2 }
  0x7c   :  { %v483_v11 = vor.u32 %v482_v1, %v481_v60  ;;  %vm488_vm1 = vcmp.lt.s32.totalorder %v1397_v32, 2  ;;  %vm489_vm2 = vcmp.lt.s32.totalorder %v1397_v32, 3  ;;  %v491_v34 = vsel %vm487_vm13, %v471_v3, %v474_v58 }
  0x7d   :  { %vm339_vm3 = vweird.f32 %v1089_v5  ;;  %vm911_vm4 = vcmp.lt.s32.totalorder %v910_v9, 0  ;;  %v486_v12 = vor.u32 %v485_v33, %v484_v18  ;;  %v492_v46 = vsel %vm490_vm15, %v480_v0, 2102212464 }
  0x7e   :  { %v495_v15 = vsel %vm487_vm13, %v474_v58, %v477_v63  ;;  %v422_v16 = vsel %vm911_vm4, 0, %v910_v9  ;;  %v496_v2 = vsel %vm490_vm15, %v483_v11, 920167782  ;;  %v499_v17 = vsel %vm487_vm13, %v477_v63, %v480_v0 }
  0x7f   :  { %vm570_vm5 = vcmp.gt.s32.totalorder %v569_v59, 0  ;;  %v423_v23 = vsub.s32 32, %v422_v16  ;;  %v424_v24 = vshll.u32 %v1392_v47, %v422_v16  ;;  %v427_v26 = vsub.s32 4294967266, %v422_v16 }
  0x80   :  { %v497_v51 = vsel %vm489_vm2, %v480_v0, %v496_v2  ;;  %v493_v27 = vsel %vm489_vm2, %v477_v63, %v492_v46  ;;  %v500_v37 = vsel %vm490_vm15, %v486_v12, 1326507024  ;;  %v571_v39 = vsel %vm570_vm5, %v569_v59, 0 }
  0x81   :  { %v498_v30 = vsel %vm488_vm1, %v495_v15, %v497_v51  ;;  %v425_v6 = vshrl.u32 %v407_v21, %v423_v23  ;;  %v428_v43 = vadd.s32 127, %v427_v26  ;;  %v440_v45 = vsel %vm1413_vm11, 0, %v438_v7 }
  0x82   :  { %v501_v47 = vsel %vm489_vm2, %v483_v11, %v500_v37  ;;  %v979_v48 = vpop.eup %978  ;;  %v1460_v4 = vmul.u32.u64.low %v1394_v31, %v498_v30  ;;  %v1461_v10 = vmul.u32.u64.high %v1394_v31, %v498_v30, %v1460_v4  ;;  %v573_v50 = vand.u32 31, %v571_v39  ;;  %v29_v30 = vld [vmem:[#allocation2 + $0x30] sm:$0xff] }
  0x83   :  { %v502_v29 = vsel %vm488_vm1, %v499_v17, %v501_v47  ;;  %v981_v53 = vpop.eup %980  ;;  %v347_v54 = vxor.u32 2147483648, %v979_v48  ;;  %v426_v21 = vor.u32 %v425_v6, %v424_v24  ;;  %v429_v62 = vshll.u32 %v428_v43, 23 }
  0x84   :  { %v494_v49 = vsel %vm488_vm1, %v491_v34, %v493_v27  ;;  %v344_v22 = vxor.u32 2147483648, %v981_v53  ;;  %v1467_v19 = vmul.u32.u64.low %v1394_v31, %v502_v29  ;;  %v1468_v28 = vmul.u32.u64.high %v1394_v31, %v502_v29, %v1467_v19 }
  0x85   :  { %v574_v56 = vsub.s32 32, %v573_v50  ;;  %v348_v20 = vsel %vm346_vm12, %v347_v54, %v981_v53  ;;  %v430_v59 = vor.u32 4788187, %v429_v62  ;;  %v433_v3 = vcvt.s32.f32 %v426_v21 }
  0x86   :  { %v576_v60 = vshll.u32 %v1053_v36, %v573_v50  ;;  %v345_v8 = vsel %vm343_vm14, %v979_v48, %v344_v22  ;;  %v510_v58 = vmul.u32 %v1394_v31, %v494_v49  ;;  %v513_v32 = vadd.s32 1, %v1461_v10 }
  0x87   :  { %v577_v63 = vshrl.u32 %v1054_v38, %v574_v56  ;;  %v349_v0 = vsel %vm342_vm0, %v345_v8, %v348_v20  ;;  %v431_v1 = vand.u32 2147483647, %v430_v59  ;;  %v579_v18 = vshll.u32 %v1054_v38, %v573_v50  ;;  %v30_v20 = vld [vmem:[#allocation2 + $0x38] sm:$0xff] }
  0x88   :  { %v580_v9 = vshrl.u32 %v1055_v40, %v574_v56  ;;  %v350_v7 = vsel %vm339_vm3, nan, %v349_v0  ;;  %v444_v33 = vadd.s32 3, %v440_v45  ;;  %vm512_vm6 = vc.u32 %v1468_v28, %v1460_v4 }
  0x89   :  { %v572_v31 = vshrl.u32 %v571_v39, 5  ;;  %v434_v11 = vmul.f32 %v433_v3, %v431_v1  ;;  %v514_v34 = vsel %vm512_vm6, %v513_v32, %v1461_v10  ;;  %v578_v12 = vor.u32 %v577_v63, %v576_v60  ;;  %873 = vst [vmem:[#allocation5 + $0x10] sm:$0xff] %v350_v7 }
  0x8a   :  { %v582_v41 = vshll.u32 %v1055_v40, %v573_v50  ;;  %v515_v46 = vadd.s32 %v514_v34, %v510_v58  ;;  %v583_v15 = vshrl.u32 %v1056_v42, %v574_v56  ;;  %v585_v16 = vshll.u32 %v1056_v42, %v573_v50 }
  0x8b   :  { %v586_v5 = vshrl.u32 %v1057_v44, %v574_v56  ;;  %v435_v2 = vxor.u32 2147483648, %v434_v11  ;;  %v581_v17 = vor.u32 %v580_v9, %v579_v18  ;;  %v588_v23 = vshll.u32 %v1057_v44, %v573_v50 }
  0x8c   :  { %v589_v24 = vshrl.u32 %v1058_v52, %v574_v56  ;;  %v516_v26 = vadd.s32 536870912, %v515_v46  ;;  %v584_v51 = vor.u32 %v583_v15, %v582_v41  ;;  %vm591_vm7 = vcmp.lt.s32.totalorder %v572_v31, 1 }
  0x8d   :  { %v587_v27 = vor.u32 %v586_v5, %v585_v16  ;;  %v436_v37 = vsel %vm353_vm10, %v435_v2, %v434_v11  ;;  %v575_v39 = vshrl.u32 %v1053_v36, %v574_v56  ;;  %vm594_vm8 = vcmp.lt.s32.totalorder %v572_v31, 4 }
  0x8e   :  { %v590_v6 = vor.u32 %v589_v24, %v588_v23  ;;  %v439_v43 = vsel %vm1413_vm11, %v1101_v25, %v436_v37  ;;  %v517_v45 = vshrl.u32 %v516_v26, 30  ;;  %vm593_vm9 = vcmp.lt.s32.totalorder %v572_v31, 3 }
  0x8f   :  { %v596_v47 = vsel %vm594_vm8, %v584_v51, 2102212464  ;;  %982 = vcosq.f32 %v439_v43  ;;  %vm592_vm12 = vcmp.lt.s32.totalorder %v572_v31, 2  ;;  %v599_v48 = vsel %vm591_vm7, %v578_v12, %v581_v17 }
  0x90   :  { %v600_v29 = vsel %vm594_vm8, %v587_v27, 920167782  ;;  %v1502_v10 = vmul.f32 30.0, %v29_v30  ;;  %984 = vsinq.f32 %v439_v43  ;;  %v518_v50 = vshll.u32 %v517_v45, 30 }
  0x91   :  { %v603_v53 = vsel %vm591_vm7, %v581_v17, %v584_v51  ;;  %v595_v54 = vsel %vm591_vm7, %v575_v39, %v578_v12  ;;  %v597_v57 = vsel %vm593_vm9, %v581_v17, %v596_v47  ;;  %v601_v21 = vsel %vm593_vm9, %v584_v51, %v600_v29 }
  0x92   :  { %v604_v62 = vsel %vm594_vm8, %v590_v6, 1326507024  ;;  %v1509_v49 = vsub.s32 %v515_v46, %v518_v50  ;;  %v541_v22 = vsub.s32 4, %v517_v45  ;;  %v602_v19 = vsel %vm592_vm12, %v599_v48, %v601_v21 }
  0x93   :  { %v605_v56 = vsel %vm593_vm9, %v587_v27, %v604_v62  ;;  %v445_v59 = vand.u32 3, %v444_v33  ;;  %v1515_v60 = vmul.u32.u64.low %v1419_v55, %v602_v19  ;;  %v1516_v8 = vmul.u32.u64.high %v1419_v55, %v602_v19, %v1515_v60 }
  0x94   :  { %v606_v3 = vsel %vm592_vm12, %v603_v53, %v605_v56  ;;  %v521_v58 = vsub.s32 0, %v1509_v49  ;;  %v598_v32 = vsel %vm592_vm12, %v595_v54, %v597_v57  ;;  %vm457_vm10 = vcmp.lt.s32.totalorder %v1182_v13, 0 }
  0x95   :  { %v1522_v63 = vmul.u32.u64.low %v1419_v55, %v606_v3  ;;  %v1523_v0 = vmul.u32.u64.high %v1419_v55, %v606_v3, %v1522_v63  ;;  %v666_v1 = vand.u32 2139095040, %v1502_v10  ;;  %v1527_v18 = vmul.f32 30.0, %v30_v20 }
  0x96   :  { %v913_v9 = vmin.u32 %v521_v58, %v1509_v49  ;;  %v542_v7 = vsel %vm457_vm10, %v541_v22, %v517_v45  ;;  %vm443_vm11 = vweird.f32 %v1101_v25  ;;  %v614_v33 = vmul.u32 %v1419_v55, %v598_v32 }
  0x97   :  { %v617_v31 = vadd.s32 1, %v1516_v8  ;;  %v667_v11 = vshrl.u32 %v666_v1, 23  ;;  %vm446_vm13 = vcmp.lt.s32.totalorder %v445_v59, 2  ;;  %vm1537_vm14 = vcmp.le.f32.partialorder %v455_v35, 0.7853982 }
  0x98   :  { %v523_v12 = vclz %v913_v9  ;;  %v663_v41 = vand.u32 2147483647, %v1502_v10  ;;  %vm450_vm15 = vcmp.eq.s32.totalorder %v445_v59, 2  ;;  %v544_v15 = vsel %vm1537_vm14, 0, %v542_v7 }
  0x99   :  { %v983_v46 = vpop.eup %982  ;;  %vm616_vm0 = vc.u32 %v1523_v0, %v1515_v60  ;;  %v920_v55 = vadd.s32 4294967169, %v667_v11  ;;  %vm447_vm1 = vcmp.eq.s32.totalorder %v445_v59, 0  ;;  %v511_v23 = vadd.s32 %v1460_v4, %v1468_v28 }
  0x9a   :  { %v985_v16 = vpop.eup %984  ;;  %v451_v5 = vxor.u32 2147483648, %v983_v46  ;;  %v914_v2 = vadd.s32 4294967294, %v523_v12  ;;  %v618_v35 = vsel %vm616_vm0, %v617_v31, %v1516_v8  ;;  %v548_v27 = vadd.s32 3, %v544_v15 }
  0x9b   :  { %v448_v17 = vxor.u32 2147483648, %v985_v16  ;;  %v619_v24 = vadd.s32 %v618_v35, %v614_v33  ;;  %v673_v26 = vadd.s32 1, %v920_v55  ;;  %v670_v30 = vand.u32 8388607, %v663_v41 }
  0x9c   :  { %v452_v51 = vsel %vm450_vm15, %v451_v5, %v985_v16  ;;  %vm915_vm2 = vcmp.lt.s32.totalorder %v914_v2, 0  ;;  %v770_v50 = vand.u32 2139095040, %v1527_v18  ;;  %v1558_v21 = vand.u32 3, %v548_v27 }
  0x9d   :  { %v449_v37 = vsel %vm447_vm1, %v983_v46, %v448_v17  ;;  %v526_v39 = vsel %vm915_vm2, 0, %v914_v2  ;;  %v620_v6 = vadd.s32 536870912, %v619_v24  ;;  %vm674_vm3 = vcmp.gt.s32.totalorder %v673_v26, 0 }
  0x9e   :  { %v453_v43 = vsel %vm446_vm13, %v449_v37, %v452_v51  ;;  %v527_v45 = vsub.s32 32, %v526_v39  ;;  %v528_v47 = vshll.u32 %v1509_v49, %v526_v39  ;;  %v531_v48 = vsub.s32 4294967266, %v526_v39 }
  0x9f   :  { %v454_v4 = vsel %vm443_vm11, nan, %v453_v43  ;;  %v1555_v28 = vshrl.u32 %v620_v6, 30  ;;  %v675_v29 = vsel %vm674_vm3, %v673_v26, 0  ;;  %v767_v56 = vand.u32 2147483647, %v1527_v18 }
  0xa0   :  { %v529_v53 = vshrl.u32 %v511_v23, %v527_v45  ;;  %v532_v54 = vadd.s32 127, %v531_v48  ;;  %v677_v57 = vand.u32 31, %v675_v29  ;;  %874 = vst [vmem:[#allocation5 + $0x18] sm:$0xff] %v454_v4  ;;  %v671_v20 = vor.u32 8388608, %v670_v30 }
  0xa1   :  { %v622_v62 = vshll.u32 %v1555_v28, 30  ;;  %v676_v59 = vshrl.u32 %v675_v29, 5  ;;  %v771_v3 = vshrl.u32 %v770_v50, 23  ;;  %v615_v15 = vadd.s32 %v1515_v60, %v1523_v0 }
  0xa2   :  { %v530_v22 = vor.u32 %v529_v53, %v528_v47  ;;  %v533_v19 = vshll.u32 %v532_v54, 23  ;;  %v678_v49 = vsub.s32 32, %v677_v57  ;;  %v680_v32 = vshll.u32 %v1053_v36, %v677_v57 }
  0xa3   :  { %v1562_v25 = vsub.s32 %v619_v24, %v622_v62  ;;  %v683_v63 = vshll.u32 %v1054_v38, %v677_v57  ;;  %v686_v33 = vshll.u32 %v1055_v40, %v677_v57  ;;  %v689_v12 = vshll.u32 %v1056_v42, %v677_v57 }
  0xa4   :  { %v534_v8 = vor.u32 4788187, %v533_v19  ;;  %v537_v58 = vcvt.s32.f32 %v530_v22  ;;  %v681_v9 = vshrl.u32 %v1054_v38, %v678_v49  ;;  %v684_v7 = vshrl.u32 %v1055_v40, %v678_v49 }
  0xa5   :  { %v625_v1 = vsub.s32 0, %v1562_v25  ;;  %v687_v11 = vshrl.u32 %v1056_v42, %v678_v49  ;;  %v690_v46 = vshrl.u32 %v1057_v44, %v678_v49  ;;  %v1576_v16 = vshll.u32 %v671_v20, 8 }
  0xa6   :  { %v535_v31 = vand.u32 2147483647, %v534_v8  ;;  %v1580_v5 = vand.u32 8388607, %v767_v56  ;;  %v679_v35 = vshrl.u32 %v1053_v36, %v678_v49  ;;  %v692_v17 = vshll.u32 %v1057_v44, %v677_v57 }
  0xa7   :  { %v917_v55 = vmin.u32 %v625_v1, %v1562_v25  ;;  %v924_v23 = vadd.s32 4294967169, %v771_v3  ;;  %v682_v26 = vor.u32 %v681_v9, %v680_v32  ;;  %v685_v51 = vor.u32 %v684_v7, %v683_v63 }
  0xa8   :  { %v538_v2 = vmul.f32 %v537_v58, %v535_v31  ;;  %v691_v27 = vor.u32 %v690_v46, %v689_v12  ;;  %v688_v60 = vor.u32 %v687_v11, %v686_v33  ;;  %v693_v0 = vshrl.u32 %v1058_v52, %v678_v49 }
  0xa9   :  { %v627_v24 = vclz %v917_v55  ;;  %vm695_vm4 = vcmp.lt.s32.totalorder %v676_v59, 1  ;;  %vm561_vm5 = vcmp.lt.s32.totalorder %v1184_v14, 0  ;;  %vm696_vm6 = vcmp.lt.s32.totalorder %v676_v59, 2 }
  0xaa   :  { %v539_v30 = vxor.u32 2147483648, %v538_v2  ;;  %vm697_vm7 = vcmp.lt.s32.totalorder %v676_v59, 3  ;;  %vm698_vm8 = vcmp.lt.s32.totalorder %v676_v59, 4  ;;  %v694_v6 = vor.u32 %v693_v0, %v692_v17 }
  0xab   :  { %v918_v37 = vadd.s32 4294967294, %v627_v24  ;;  %v699_v43 = vsel %vm695_vm4, %v679_v35, %v682_v26  ;;  %v700_v45 = vsel %vm698_vm8, %v688_v60, 2102212464  ;;  %v703_v48 = vsel %vm695_vm4, %v682_v26, %v685_v51 }
  0xac   :  { %v540_v39 = vsel %vm457_vm10, %v539_v30, %v538_v2  ;;  %v704_v4 = vsel %vm698_vm8, %v691_v27, 920167782  ;;  %v701_v50 = vsel %vm697_vm7, %v685_v51, %v700_v45  ;;  %v645_v22 = vsub.s32 4, %v1555_v28 }
  0xad   :  { %v543_v47 = vsel %vm1537_vm14, %v1182_v13, %v540_v39  ;;  %vm919_vm9 = vcmp.lt.s32.totalorder %v918_v37, 0  ;;  %v705_v53 = vsel %vm697_vm7, %v688_v60, %v704_v4  ;;  %v707_v19 = vsel %vm695_vm4, %v685_v51, %v688_v60 }
  0xae   :  { %986 = vcosq.f32 %v543_v47  ;;  %v630_v29 = vsel %vm919_vm9, 0, %v918_v37  ;;  %v706_v34 = vsel %vm696_vm6, %v703_v48, %v705_v53  ;;  %v708_v49 = vsel %vm698_vm8, %v694_v6, 1326507024 }
  0xaf   :  { %988 = vsinq.f32 %v543_v47  ;;  %v631_v54 = vsub.s32 32, %v630_v29  ;;  %v632_v57 = vshll.u32 %v1562_v25, %v630_v29  ;;  %v635_v62 = vsub.s32 4294967266, %v630_v29 }
  0xb0   :  { %v709_v8 = vsel %vm697_vm7, %v691_v27, %v708_v49  ;;  %v777_v58 = vadd.s32 1, %v924_v23  ;;  %v702_v32 = vsel %vm696_vm6, %v699_v43, %v701_v50  ;;  %vm547_vm12 = vweird.f32 %v1182_v13 }
  0xb1   :  { %v633_v20 = vshrl.u32 %v615_v15, %v631_v54  ;;  %v636_v3 = vadd.s32 127, %v635_v62  ;;  %v710_v63 = vsel %vm696_vm6, %v707_v19, %v709_v8  ;;  %vm1617_vm10 = vcmp.le.f32.partialorder %v559_v61, 0.7853982 }
  0xb2   :  { %v1606_v25 = vmul.u32.u64.low %v1576_v16, %v706_v34  ;;  %v1607_v1 = vmul.u32.u64.high %v1576_v16, %v706_v34, %v1606_v25  ;;  %v1611_v33 = vmul.u32.u64.low %v1576_v16, %v710_v63  ;;  %v1612_v31 = vmul.u32.u64.high %v1576_v16, %v710_v63, %v1611_v33 }
  0xb3   :  { %v634_v9 = vor.u32 %v633_v20, %v632_v57  ;;  %v637_v7 = vshll.u32 %v636_v3, 23  ;;  %v646_v59 = vsel %vm561_vm5, %v645_v22, %v1555_v28  ;;  %vm778_vm11 = vcmp.gt.s32.totalorder %v777_v58, 0 }
  0xb4   :  { %v718_v15 = vmul.u32 %v1576_v16, %v702_v32  ;;  %v779_v55 = vsel %vm778_vm11, %v777_v58, 0  ;;  %vm550_vm13 = vcmp.lt.s32.totalorder %v1558_v21, 2  ;;  %vm551_vm14 = vcmp.eq.s32.totalorder %v1558_v21, 0 }
  0xb5   :  { %v638_v12 = vor.u32 4788187, %v637_v7  ;;  %v641_v46 = vcvt.s32.f32 %v634_v9  ;;  %v721_v2 = vadd.s32 1, %v1607_v1  ;;  %v781_v61 = vand.u32 31, %v779_v55 }
  0xb6   :  { %vm554_vm15 = vcmp.eq.s32.totalorder %v1558_v21, 2  ;;  %vm720_vm0 = vc.u32 %v1612_v31, %v1606_v25  ;;  %v775_v28 = vor.u32 8388608, %v1580_v5  ;;  %v648_v16 = vsel %vm1617_vm10, 0, %v646_v59 }
  0xb7   :  { %v639_v35 = vand.u32 2147483647, %v638_v12  ;;  %v722_v23 = vsel %vm720_vm0, %v721_v2, %v1607_v1  ;;  %v782_v24 = vsub.s32 32, %v781_v61  ;;  %v784_v26 = vshll.u32 %v1053_v36, %v781_v61 }
  0xb8   :  { %v987_v17 = vpop.eup %986  ;;  %v723_v60 = vadd.s32 %v722_v23, %v718_v15  ;;  %v787_v0 = vshll.u32 %v1054_v38, %v781_v61  ;;  %v780_v39 = vshrl.u32 %v779_v55, 5  ;;  %v790_v48 = vshll.u32 %v1055_v40, %v781_v61 }
  0xb9   :  { %v989_v51 = vpop.eup %988  ;;  %v555_v27 = vxor.u32 2147483648, %v987_v17  ;;  %v642_v30 = vmul.f32 %v641_v46, %v639_v35  ;;  %v785_v6 = vshrl.u32 %v1054_v38, %v782_v24  ;;  %v788_v5 = vshrl.u32 %v1055_v40, %v782_v24 }
  0xba   :  { %v552_v37 = vxor.u32 2147483648, %v989_v51  ;;  %v724_v47 = vadd.s32 536870912, %v723_v60  ;;  %v791_v50 = vshrl.u32 %v1056_v42, %v782_v24  ;;  %v793_v53 = vshll.u32 %v1056_v42, %v781_v61 }
  0xbb   :  { %v556_v43 = vsel %vm554_vm15, %v555_v27, %v989_v51  ;;  %v643_v45 = vxor.u32 2147483648, %v642_v30  ;;  %v786_v29 = vor.u32 %v785_v6, %v784_v26  ;;  %v789_v62 = vor.u32 %v788_v5, %v787_v0 }
  0xbc   :  { %v553_v4 = vsel %vm551_vm14, %v987_v17, %v552_v37  ;;  %v1650_v57 = vshrl.u32 %v724_v47, 30  ;;  %v794_v34 = vshrl.u32 %v1057_v44, %v782_v24  ;;  %v796_v42 = vshll.u32 %v1057_v44, %v781_v61 }
  0xbd   :  { %v557_v38 = vsel %vm550_vm13, %v553_v4, %v556_v43  ;;  %v644_v54 = vsel %vm561_vm5, %v643_v45, %v642_v30  ;;  %v652_v21 = vadd.s32 3, %v648_v16  ;;  %v797_v49 = vshrl.u32 %v1058_v52, %v782_v24 }
  0xbe   :  { %v558_v40 = vsel %vm547_vm12, nan, %v557_v38  ;;  %v647_v22 = vsel %vm1617_vm10, %v1184_v14, %v644_v54  ;;  %v726_v19 = vshll.u32 %v1650_v57, 30  ;;  %v792_v20 = vor.u32 %v791_v50, %v790_v48 }
  0xbf   :  { %990 = vcosq.f32 %v647_v22  ;;  %875 = vst [vmem:[#allocation5 + $0x20] sm:$0xff] %v558_v40  ;;  %v795_v3 = vor.u32 %v794_v34, %v793_v53  ;;  %vm799_vm1 = vcmp.lt.s32.totalorder %v780_v39, 1  ;;  %v783_v8 = vshrl.u32 %v1053_v36, %v782_v24 }
  0xc0   :  { %992 = vsinq.f32 %v647_v22  ;;  %v727_v13 = vsub.s32 %v723_v60, %v726_v19  ;;  %v798_v58 = vor.u32 %v797_v49, %v796_v42  ;;  %vm801_vm2 = vcmp.lt.s32.totalorder %v780_v39, 3 }
  0xc1   :  { %vm800_vm3 = vcmp.lt.s32.totalorder %v780_v39, 2  ;;  %vm802_vm4 = vcmp.lt.s32.totalorder %v780_v39, 4  ;;  %v807_v44 = vsel %vm799_vm1, %v786_v29, %v789_v62  ;;  %v815_v32 = vshll.u32 %v775_v28, 8 }
  0xc2   :  { %v729_v63 = vsub.s32 0, %v727_v13  ;;  %v804_v1 = vsel %vm802_vm4, %v792_v20, 2102212464  ;;  %v808_v9 = vsel %vm802_vm4, %v795_v3, 920167782  ;;  %v653_v7 = vand.u32 3, %v652_v21 }
  0xc3   :  { %v809_v52 = vsel %vm801_vm2, %v792_v20, %v808_v9  ;;  %v812_v33 = vsel %vm802_vm4, %v798_v58, 1326507024  ;;  %v803_v59 = vsel %vm799_vm1, %v783_v8, %v786_v29  ;;  %v811_v36 = vsel %vm799_vm1, %v789_v62, %v792_v20 }
  0xc4   :  { %v921_v11 = vmin.u32 %v729_v63, %v727_v13  ;;  %v810_v12 = vsel %vm800_vm3, %v807_v44, %v809_v52  ;;  %v805_v46 = vsel %vm801_vm2, %v789_v62, %v804_v1  ;;  %v813_v15 = vsel %vm801_vm2, %v795_v3, %v812_v33 }
  0xc5   :  { %v1669_v55 = vmul.u32.u64.low %v815_v32, %v810_v12  ;;  %v1670_v2 = vmul.u32.u64.high %v815_v32, %v810_v12, %v1669_v55  ;;  %vm658_vm5 = vcmp.eq.s32.totalorder %v653_v7, 2  ;;  %v814_v35 = vsel %vm800_vm3, %v811_v36, %v813_v15 }
  0xc6   :  { %v731_v61 = vclz %v921_v11  ;;  %v806_v16 = vsel %vm800_vm3, %v803_v59, %v805_v46  ;;  %v1674_v23 = vmul.u32.u64.low %v815_v32, %v814_v35  ;;  %v1675_v24 = vmul.u32.u64.high %v815_v32, %v814_v35, %v1674_v23 }
  0xc7   :  { %vm654_vm6 = vcmp.lt.s32.totalorder %v653_v7, 2  ;;  %vm655_vm7 = vcmp.eq.s32.totalorder %v653_v7, 0  ;;  %v719_v30 = vadd.s32 %v1606_v25, %v1612_v31  ;;  %v825_v60 = vadd.s32 1, %v1670_v2 }
  0xc8   :  { %v922_v17 = vadd.s32 4294967294, %v731_v61  ;;  %vm651_vm9 = vweird.f32 %v1184_v14  ;;  %v822_v39 = vmul.u32 %v815_v32, %v806_v16  ;;  %vm824_vm12 = vc.u32 %v1675_v24, %v1669_v55 }
  0xc9   :  { %v991_v28 = vpop.eup %990  ;;  %v826_v31 = vsel %vm824_vm12, %v825_v60, %v1670_v2  ;;  %v749_v22 = vsub.s32 4, %v1650_v57  ;;  %vm665_vm10 = vcmp.lt.s32.totalorder %v1502_v10, 0  ;;  %vm664_vm11 = vcmp.le.f32.partialorder %v663_v41, 0.7853982 }
  0xca   :  { %v993_v26 = vpop.eup %992  ;;  %v659_v51 = vxor.u32 2147483648, %v991_v28  ;;  %vm923_vm8 = vcmp.lt.s32.totalorder %v922_v17, 0  ;;  %v827_v29 = vadd.s32 %v826_v31, %v822_v39  ;;  %v823_v1 = vadd.s32 %v1669_v55, %v1675_v24 }
  0xcb   :  { %v656_v27 = vxor.u32 2147483648, %v993_v26  ;;  %v734_v37 = vsel %vm923_vm8, 0, %v922_v17  ;;  %v750_v49 = vsel %vm665_vm10, %v749_v22, %v1650_v57  ;;  %vm755_vm1 = vweird.f32 %v1502_v10 }
  0xcc   :  { %v660_v0 = vsel %vm658_vm5, %v659_v51, %v993_v26  ;;  %v735_v5 = vsub.s32 32, %v734_v37  ;;  %v736_v43 = vshll.u32 %v727_v13, %v734_v37  ;;  %v739_v45 = vsub.s32 4294967266, %v734_v37 }
  0xcd   :  { %v657_v6 = vsel %vm655_vm7, %v991_v28, %v656_v27  ;;  %v828_v53 = vadd.s32 536870912, %v827_v29  ;;  %v752_v8 = vsel %vm664_vm11, 0, %v750_v49  ;;  %vm769_vm2 = vcmp.lt.s32.totalorder %v1527_v18, 0 }
  0xce   :  { %v661_v47 = vsel %vm654_vm6, %v657_v6, %v660_v0  ;;  %v737_v4 = vshrl.u32 %v719_v30, %v735_v5  ;;  %v740_v25 = vadd.s32 127, %v739_v45  ;;  %v756_v32 = vadd.s32 3, %v752_v8 }
  0xcf   :  { %v662_v48 = vsel %vm651_vm9, nan, %v661_v47  ;;  %v829_v62 = vshrl.u32 %v828_v53, 30  ;;  %vm768_vm3 = vcmp.le.f32.partialorder %v767_v56, 0.7853982  ;;  %vm859_vm7 = vweird.f32 %v1527_v18 }
  0xd0   :  { %876 = vst [vmem:[#allocation5 + $0x28] sm:$0xff] %v662_v48  ;;  %v738_v14 = vor.u32 %v737_v4, %v736_v43  ;;  %v741_v50 = vshll.u32 %v740_v25, 23  ;;  %v757_v9 = vand.u32 3, %v756_v32 }
  0xd1   :  { %v830_v34 = vshll.u32 %v829_v62, 30  ;;  %v853_v23 = vsub.s32 4, %v829_v62 }
  0xd2   :  { %v742_v38 = vor.u32 4788187, %v741_v50  ;;  %v745_v54 = vcvt.s32.f32 %v738_v14  ;;  %vm762_vm14 = vcmp.eq.s32.totalorder %v757_v9, 2  ;;  %vm759_vm15 = vcmp.eq.s32.totalorder %v757_v9, 0 }
  0xd3   :  { %v831_v21 = vsub.s32 %v827_v29, %v830_v34  ;;  %vm758_vm0 = vcmp.lt.s32.totalorder %v757_v9, 2  ;;  %v854_v27 = vsel %vm769_vm2, %v853_v23, %v829_v62 }
  0xd4   :  { %v743_v40 = vand.u32 2147483647, %v742_v38  ;;  %v856_v60 = vsel %vm768_vm3, 0, %v854_v27 }
  0xd5   :  { %v833_v20 = vsub.s32 0, %v831_v21  ;;  %v860_v0 = vadd.s32 3, %v856_v60 }
  0xd6   :  { %v746_v42 = vmul.f32 %v745_v54, %v743_v40 }
  0xd7   :  { %v925_v58 = vmin.u32 %v833_v20, %v831_v21  ;;  %v861_v37 = vand.u32 3, %v860_v0 }
  0xd8   :  { %v747_v19 = vxor.u32 2147483648, %v746_v42 }
  0xd9   :  { %v835_v44 = vclz %v925_v58  ;;  %vm866_vm4 = vcmp.eq.s32.totalorder %v861_v37, 2  ;;  %vm863_vm5 = vcmp.eq.s32.totalorder %v861_v37, 0  ;;  %vm862_vm6 = vcmp.lt.s32.totalorder %v861_v37, 2 }
  0xda   :  { %v748_v3 = vsel %vm665_vm10, %v747_v19, %v746_v42 }
  0xdb   :  { %v751_v13 = vsel %vm664_vm11, %v1502_v10, %v748_v3  ;;  %v926_v63 = vadd.s32 4294967294, %v835_v44 }
  0xdc   :  { %994 = vcosq.f32 %v751_v13 }
  0xdd   :  { %996 = vsinq.f32 %v751_v13  ;;  %vm927_vm13 = vcmp.lt.s32.totalorder %v926_v63, 0 }
  0xde   :  { %v838_v7 = vsel %vm927_vm13, 0, %v926_v63 }
  0xdf   :  { %v839_v41 = vsub.s32 32, %v838_v7  ;;  %v840_v52 = vshll.u32 %v831_v21, %v838_v7  ;;  %v843_v33 = vsub.s32 4294967266, %v838_v7 }
  0xe1   :  { %v841_v57 = vshrl.u32 %v823_v1, %v839_v41  ;;  %v844_v11 = vadd.s32 127, %v843_v33 }
  0xe3   :  { %v842_v46 = vor.u32 %v841_v57, %v840_v52  ;;  %v845_v15 = vshll.u32 %v844_v11, 23 }
  0xe5   :  { %v846_v61 = vor.u32 4788187, %v845_v15  ;;  %v849_v35 = vcvt.s32.f32 %v842_v46 }
  0xe6   :  { %v995_v59 = vpop.eup %994 }
  0xe7   :  { %v997_v12 = vpop.eup %996  ;;  %v763_v36 = vxor.u32 2147483648, %v995_v59  ;;  %v847_v16 = vand.u32 2147483647, %v846_v61 }
  0xe8   :  { %v760_v2 = vxor.u32 2147483648, %v997_v12 }
  0xe9   :  { %v764_v55 = vsel %vm762_vm14, %v763_v36, %v997_v12  ;;  %v850_v26 = vmul.f32 %v849_v35, %v847_v16 }
  0xea   :  { %v761_v28 = vsel %vm759_vm15, %v995_v59, %v760_v2 }
  0xeb   :  { %v765_v17 = vsel %vm758_vm0, %v761_v28, %v764_v55  ;;  %v851_v51 = vxor.u32 2147483648, %v850_v26 }
  0xec   :  { %v766_v24 = vsel %vm755_vm1, nan, %v765_v17 }
  0xed   :  { %877 = vst [vmem:[#allocation5 + $0x30] sm:$0xff] %v766_v24  ;;  %v852_v30 = vsel %vm769_vm2, %v851_v51, %v850_v26 }
  0xee   :  { %v855_v10 = vsel %vm768_vm3, %v1527_v18, %v852_v30 }
  0xef   :  { %998 = vcosq.f32 %v855_v10 }
  0xf0   :  { %1000 = vsinq.f32 %v855_v10 }
  0xf9   :  { %v999_v39 = vpop.eup %998 }
  0xfa   :  { %v1001_v6 = vpop.eup %1000  ;;  %v867_v5 = vxor.u32 2147483648, %v999_v39 }
  0xfb   :  { %v864_v43 = vxor.u32 2147483648, %v1001_v6 }
  0xfc   :  { %v868_v56 = vsel %vm866_vm4, %v867_v5, %v1001_v6 }
  0xfd   :  { %v865_v45 = vsel %vm863_vm5, %v999_v39, %v864_v43 }
  0xfe   :  { %v869_v47 = vsel %vm862_vm6, %v865_v45, %v868_v56 }
  0xff   :  { %v870_v48 = vsel %vm859_vm7, nan, %v869_v47 }
 0x100   :  { %878 = vst [vmem:[#allocation5 + $0x38] sm:$0xff] %v870_v48 }
 0x101   :  { %1035 = shalt.err (!%p1032_p12)
}
 0x102   :  { %s1036_s24 = scalar_lea.hbm %s1714_s1, 1024 }
 0x103   :  { %p1037_p13 = scmp.ne.s32.totalorder %s1714_s1, %s1036_s24  ;;  %p1040_p0 = scmp.lt.u32.totalorder %s1036_s24, %s1714_s1 }
 0x105   :  { %p1042_p1 = pnand %p1040_p0, %p1037_p13 }
 0x107   :  { %1045 = shalt.err (!%p1042_p1)
}
 0x108   :  { %890 = dma.vmem_to_hbm [thread:$0]  %s885_s20, 1024, %s1714_s1, [#allocation4], %s1051_s16, %s1051_s16, %s1052_s17  }
 0x109   :  { %1048 = dma.done.wait [#allocation4], 1024  }
 0x10a   :  { %1049 = vsyncadd [#allocation4], 4294966272 }
 0x10b   :  { %894 = vsyncpa [#allocation3], 1 }
 0x10c   :  { %895 = vsyncpa [#allocation4], 1 }

</bundles_post_ra>
